<compile_context>
chip_gen: v7x
topology: tpu7x:2x2x1
jax: 0.10.0
libtpu: 0.0.40
codegen_flags: <defaults>
</compile_context>

<pallas_src>
import functools

import jax
import jax.numpy as jnp
from jax.experimental import pallas as pl
from jax.experimental.pallas import tpu as pltpu

LANES = 128        # TPU lane width
PACK_ROWS = 16     # packed-parameter slab rows (multiple of 8 sublanes)


def _tpu_tile_config():
    """Per-generation (batch tile, scoped-VMEM limit) for this mem-bound kernel."""
    kind = ""
    try:
        kind = jax.devices()[0].device_kind.lower()
    except Exception:
        pass
    vmem = None
    try:
        vmem = int(pltpu.get_tpu_info().vmem_capacity_bytes)
    except Exception:
        pass
    if "v7" in kind or (vmem is not None and vmem <= (64 << 20)):
        # v7x: 64 MiB VMEM per TensorCore -> smaller tile, leave pipeline headroom.
        return 65536, 48 << 20
    # v5e / v6e: 128 MiB physical VMEM -> bigger tile, raise the scoped limit.
    return 131072, 80 << 20


def pack_params(w1, b1, w2, b2):
    """Pack all parameters into one (16, 128) f32 slab (single DMA).

    Transposed layout (batch is on the lane axis inside the kernel):
      [0:H,     0:F   ] = W1.T   (n_hidden, n_feature)
      [0:H,     F:F+1 ] = b1     (n_hidden, 1)
      [H:H+O,   0:H   ] = W2.T   (n_output, n_hidden)
      [H:H+O,   H:H+1 ] = b2     (n_output, 1)
    """
    F, H = w1.shape
    O = w2.shape[1]
    assert H + O <= PACK_ROWS and max(F + 1, H + 1) <= LANES
    p = jnp.zeros((PACK_ROWS, LANES), jnp.float32)
    p = p.at[0:H, 0:F].set(w1.T)
    p = p.at[0:H, F:F + 1].set(b1.reshape(H, 1))
    p = p.at[H:H + O, 0:H].set(w2.T)
    p = p.at[H:H + O, H:H + 1].set(b2.reshape(O, 1))
    return p


def _mlp_kernel(xt_ref, p_ref, ot_ref, *, n_feature, n_hidden, n_output):
    # xt_ref: (n_feature, TB)      -- batch on the lane axis
    # p_ref : (PACK_ROWS, LANES)   -- packed params (see pack_params)
    # ot_ref: (n_output, TB)       -- lane-dense output store
    xt = xt_ref[...]
    p = p_ref[...]
    w1t = p[0:n_hidden, 0:n_feature]                              # (H, F)
    b1t = p[0:n_hidden, n_feature:n_feature + 1]                  # (H, 1)
    w2t = p[n_hidden:n_hidden + n_output, 0:n_hidden]             # (O, H)
    b2t = p[n_hidden:n_hidden + n_output, n_hidden:n_hidden + 1]  # (O, 1)

    # Layer 1: K = n_feature (=2) contraction as broadcast FMAs on the VPU.
    h = b1t
    for i in range(n_feature):
        h = h + w1t[:, i:i + 1] * xt[i:i + 1, :]                  # (H, TB)
    h = jnp.maximum(h, 0.0)                                       # ReLU

    # Layer 2: K = n_hidden (=8) contraction, unrolled FMAs.
    o = b2t
    for k in range(n_hidden):
        o = o + w2t[:, k:k + 1] * h[k:k + 1, :]                   # (O, TB)

    ot_ref[...] = o.astype(ot_ref.dtype)


def _cost(B, n_feature, n_hidden, n_output):
    return pl.CostEstimate(
        flops=2 * (n_feature * n_hidden + n_hidden * n_output) * B,
        transcendentals=0,
        bytes_accessed=4 * (n_feature + n_output) * B + 4 * PACK_ROWS * LANES,
    )


def net_forward_t(xt, packed, *, n_feature=2, n_hidden=8, n_output=2,
                  block_b=None, vmem_limit_bytes=None):
    """Feature-major forward pass (fast path).

    xt: (n_feature, B) f32 -- batch on the minor (lane) axis end-to-end, so
    no transpose / pad / slice HBM passes are needed around the kernel.
    Returns (n_output, B) f32.
    """
    auto_tb, auto_limit = _tpu_tile_config()
    tb = block_b if block_b is not None else auto_tb
    vlimit = vmem_limit_bytes if vmem_limit_bytes is not None else auto_limit
    assert tb % LANES == 0

    if xt.dtype != jnp.float32:
        xt = xt.astype(jnp.float32)
    B = xt.shape[1]
    kernel = functools.partial(_mlp_kernel, n_feature=n_feature,
                               n_hidden=n_hidden, n_output=n_output)

    if B <= tb:
        # Single whole-array block, no grid: no pipeline prologue/epilogue,
        # 2 input DMAs + 1 output DMA total.
        return pl.pallas_call(
            kernel,
            out_shape=jax.ShapeDtypeStruct((n_output, B), jnp.float32),
            in_specs=[pl.BlockSpec(memory_space=pltpu.MemorySpace.VMEM),
                      pl.BlockSpec(memory_space=pltpu.MemorySpace.VMEM)],
            out_specs=pl.BlockSpec(memory_space=pltpu.MemorySpace.VMEM),
            compiler_params=pltpu.CompilerParams(vmem_limit_bytes=vlimit),
            cost_estimate=_cost(B, n_feature, n_hidden, n_output),
        )(xt, packed)

    # Large batch: tile the lane (batch) axis with generation-sized tb.
    # No padding: Pallas masks the partial final block's OOB output lanes
    # (all math here is per-lane elementwise, so garbage tail-lanes in the
    # input never contaminate valid lanes).  Params stay VMEM-resident
    # (index_map -> (0, 0) on every step).
    return pl.pallas_call(
        kernel,
        out_shape=jax.ShapeDtypeStruct((n_output, B), jnp.float32),
        grid=(pl.cdiv(B, tb),),
        in_specs=[pl.BlockSpec((n_feature, tb), lambda i: (0, i)),
                  pl.BlockSpec((PACK_ROWS, LANES), lambda i: (0, 0))],
        out_specs=pl.BlockSpec((n_output, tb), lambda i: (0, i)),
        compiler_params=pltpu.CompilerParams(
            dimension_semantics=("parallel",),
            vmem_limit_bytes=vlimit),
        cost_estimate=_cost(B, n_feature, n_hidden, n_output),
    )(xt, packed)


def net_forward(x, packed, **kw):
    """Batch-major convenience wrapper matching the PyTorch module's API.

    x: (B, n_feature) -> (B, n_output).  Note: the transposes here are extra
    HBM passes; prefer net_forward_t with feature-major I/O in hot paths.
    """
    return net_forward_t(x.T, packed, **kw).T


def init_params(key, n_feature=2, n_hidden=8, n_output=2):
    # Mimics nn.Linear's uniform(-1/sqrt(fan_in), 1/sqrt(fan_in)) init.
    k1, k2, k3, k4 = jax.random.split(key, 4)
    bound1 = 1.0 / (n_feature ** 0.5)
    bound2 = 1.0 / (n_hidden ** 0.5)
    w1 = jax.random.uniform(k1, (n_feature, n_hidden), jnp.float32, -bound1, bound1)
    b1 = jax.random.uniform(k2, (n_hidden,), jnp.float32, -bound1, bound1)
    w2 = jax.random.uniform(k3, (n_hidden, n_output), jnp.float32, -bound2, bound2)
    b2 = jax.random.uniform(k4, (n_output,), jnp.float32, -bound2, bound2)
    return w1, b1, w2, b2


def ref_forward(x, w1, b1, w2, b2):
    hi = jax.lax.Precision.HIGHEST
    h = jnp.maximum(jnp.dot(x, w1, precision=hi) + b1, 0.0)
    return jnp.dot(h, w2, precision=hi) + b2


# TODO(synk): Net.train (SGD + CrossEntropyLoss loop) and Net.save are
# host-side training/IO utilities, not part of the forward pass; not ported.

if __name__ == "__main__":
    key = jax.random.PRNGKey(0)
    k_param, k_small, k_big = jax.random.split(key, 3)

    n_feature, n_hidden, n_output = 2, 8, 2
    w1, b1, w2, b2 = init_params(k_param, n_feature, n_hidden, n_output)
    packed = pack_params(w1, b1, w2, b2)

    # --- small batch (two Gaussian blobs, as in the PyTorch example) --------
    # Batch-major convenience API; hits the single-block (no grid) path.
    batch = 16
    half = batch // 2
    x0 = 3.0 + jax.random.normal(k_small, (half, n_feature), jnp.float32)
    x1 = -3.0 + jax.random.normal(jax.random.fold_in(k_small, 1),
                                  (half, n_feature), jnp.float32)
    x_small = jnp.concatenate([x0, x1], axis=0)

    logits = net_forward(x_small, packed)
    jax.block_until_ready(logits)
    ref = ref_forward(x_small, w1, b1, w2, b2)
    assert logits.shape == (batch, n_output)
    assert jnp.allclose(logits, ref, atol=1e-4, rtol=1e-4)

    # --- large ragged batch: feature-major fast path, gridded with the ------
    # production tile size; the final block is partial (no pad / no slice).
    tb_auto, _ = _tpu_tile_config()
    big = tb_auto + 137
    xt_big = 3.0 * jax.random.normal(k_big, (n_feature, big), jnp.float32)
    ot_big = net_forward_t(xt_big, packed)
    jax.block_until_ready(ot_big)
    ref_big = ref_forward(xt_big.T, w1, b1, w2, b2).T
    assert ot_big.shape == (n_output, big)
    assert jnp.allclose(ot_big, ref_big, atol=1e-4, rtol=1e-4)

    print("KERNEL_OK")
</pallas_src>

<mosaic_0001>
module attributes {stable_mosaic.version = 11 : i64} {
  func.func @_mlp_kernel(%arg0: memref<2x16xf32, #tpu.memory_space<vmem>>, %arg1: memref<16x128xf32, #tpu.memory_space<vmem>>, %arg2: memref<2x16xf32, #tpu.memory_space<vmem>>) attributes {dimension_semantics = [], scalar_prefetch = 0 : i64, scratch_operands = 0 : i64, tpu.core_type = #tpu.core_type<tc>} {
    %c0 = arith.constant 0 : index
    %c0_0 = arith.constant 0 : index
    %0 = vector.load %arg0[%c0, %c0_0] : memref<2x16xf32, #tpu.memory_space<vmem>>, vector<2x16xf32>
    %c0_1 = arith.constant 0 : index
    %c0_2 = arith.constant 0 : index
    %1 = vector.load %arg1[%c0_1, %c0_2] : memref<16x128xf32, #tpu.memory_space<vmem>>, vector<16x128xf32>
    %2 = vector.extract_strided_slice %1 {offsets = [0, 0], sizes = [8, 2], strides = [1, 1]} : vector<16x128xf32> to vector<8x2xf32>
    %3 = vector.extract_strided_slice %1 {offsets = [0, 2], sizes = [8, 1], strides = [1, 1]} : vector<16x128xf32> to vector<8x1xf32>
    %4 = vector.extract_strided_slice %1 {offsets = [8, 0], sizes = [2, 8], strides = [1, 1]} : vector<16x128xf32> to vector<2x8xf32>
    %5 = vector.extract_strided_slice %1 {offsets = [8, 8], sizes = [2, 1], strides = [1, 1]} : vector<16x128xf32> to vector<2x1xf32>
    %6 = vector.extract_strided_slice %2 {offsets = [0, 0], sizes = [8, 1], strides = [1, 1]} : vector<8x2xf32> to vector<8x1xf32>
    %7 = vector.extract_strided_slice %0 {offsets = [0, 0], sizes = [1, 16], strides = [1, 1]} : vector<2x16xf32> to vector<1x16xf32>
    %8 = vector.broadcast %6 : vector<8x1xf32> to vector<8x16xf32>
    %9 = vector.broadcast %7 : vector<1x16xf32> to vector<8x16xf32>
    %10 = arith.mulf %8, %9 : vector<8x16xf32>
    %11 = vector.broadcast %3 : vector<8x1xf32> to vector<8x16xf32>
    %12 = arith.addf %11, %10 : vector<8x16xf32>
    %13 = vector.extract_strided_slice %2 {offsets = [0, 1], sizes = [8, 1], strides = [1, 1]} : vector<8x2xf32> to vector<8x1xf32>
    %14 = vector.extract_strided_slice %0 {offsets = [1, 0], sizes = [1, 16], strides = [1, 1]} : vector<2x16xf32> to vector<1x16xf32>
    %15 = vector.broadcast %13 : vector<8x1xf32> to vector<8x16xf32>
    %16 = vector.broadcast %14 : vector<1x16xf32> to vector<8x16xf32>
    %17 = arith.mulf %15, %16 : vector<8x16xf32>
    %18 = arith.addf %12, %17 : vector<8x16xf32>
    %cst = arith.constant 0.000000e+00 : f32
    %19 = vector.broadcast %cst : f32 to vector<8x16xf32>
    %20 = arith.maximumf %18, %19 : vector<8x16xf32>
    %21 = vector.extract_strided_slice %4 {offsets = [0, 0], sizes = [2, 1], strides = [1, 1]} : vector<2x8xf32> to vector<2x1xf32>
    %22 = vector.extract_strided_slice %20 {offsets = [0, 0], sizes = [1, 16], strides = [1, 1]} : vector<8x16xf32> to vector<1x16xf32>
    %23 = vector.broadcast %21 : vector<2x1xf32> to vector<2x16xf32>
    %24 = vector.broadcast %22 : vector<1x16xf32> to vector<2x16xf32>
    %25 = arith.mulf %23, %24 : vector<2x16xf32>
    %26 = vector.broadcast %5 : vector<2x1xf32> to vector<2x16xf32>
    %27 = arith.addf %26, %25 : vector<2x16xf32>
    %28 = vector.extract_strided_slice %4 {offsets = [0, 1], sizes = [2, 1], strides = [1, 1]} : vector<2x8xf32> to vector<2x1xf32>
    %29 = vector.extract_strided_slice %20 {offsets = [1, 0], sizes = [1, 16], strides = [1, 1]} : vector<8x16xf32> to vector<1x16xf32>
    %30 = vector.broadcast %28 : vector<2x1xf32> to vector<2x16xf32>
    %31 = vector.broadcast %29 : vector<1x16xf32> to vector<2x16xf32>
    %32 = arith.mulf %30, %31 : vector<2x16xf32>
    %33 = arith.addf %27, %32 : vector<2x16xf32>
    %34 = vector.extract_strided_slice %4 {offsets = [0, 2], sizes = [2, 1], strides = [1, 1]} : vector<2x8xf32> to vector<2x1xf32>
    %35 = vector.extract_strided_slice %20 {offsets = [2, 0], sizes = [1, 16], strides = [1, 1]} : vector<8x16xf32> to vector<1x16xf32>
    %36 = vector.broadcast %34 : vector<2x1xf32> to vector<2x16xf32>
    %37 = vector.broadcast %35 : vector<1x16xf32> to vector<2x16xf32>
    %38 = arith.mulf %36, %37 : vector<2x16xf32>
    %39 = arith.addf %33, %38 : vector<2x16xf32>
    %40 = vector.extract_strided_slice %4 {offsets = [0, 3], sizes = [2, 1], strides = [1, 1]} : vector<2x8xf32> to vector<2x1xf32>
    %41 = vector.extract_strided_slice %20 {offsets = [3, 0], sizes = [1, 16], strides = [1, 1]} : vector<8x16xf32> to vector<1x16xf32>
    %42 = vector.broadcast %40 : vector<2x1xf32> to vector<2x16xf32>
    %43 = vector.broadcast %41 : vector<1x16xf32> to vector<2x16xf32>
    %44 = arith.mulf %42, %43 : vector<2x16xf32>
    %45 = arith.addf %39, %44 : vector<2x16xf32>
    %46 = vector.extract_strided_slice %4 {offsets = [0, 4], sizes = [2, 1], strides = [1, 1]} : vector<2x8xf32> to vector<2x1xf32>
    %47 = vector.extract_strided_slice %20 {offsets = [4, 0], sizes = [1, 16], strides = [1, 1]} : vector<8x16xf32> to vector<1x16xf32>
    %48 = vector.broadcast %46 : vector<2x1xf32> to vector<2x16xf32>
    %49 = vector.broadcast %47 : vector<1x16xf32> to vector<2x16xf32>
    %50 = arith.mulf %48, %49 : vector<2x16xf32>
    %51 = arith.addf %45, %50 : vector<2x16xf32>
    %52 = vector.extract_strided_slice %4 {offsets = [0, 5], sizes = [2, 1], strides = [1, 1]} : vector<2x8xf32> to vector<2x1xf32>
    %53 = vector.extract_strided_slice %20 {offsets = [5, 0], sizes = [1, 16], strides = [1, 1]} : vector<8x16xf32> to vector<1x16xf32>
    %54 = vector.broadcast %52 : vector<2x1xf32> to vector<2x16xf32>
    %55 = vector.broadcast %53 : vector<1x16xf32> to vector<2x16xf32>
    %56 = arith.mulf %54, %55 : vector<2x16xf32>
    %57 = arith.addf %51, %56 : vector<2x16xf32>
    %58 = vector.extract_strided_slice %4 {offsets = [0, 6], sizes = [2, 1], strides = [1, 1]} : vector<2x8xf32> to vector<2x1xf32>
    %59 = vector.extract_strided_slice %20 {offsets = [6, 0], sizes = [1, 16], strides = [1, 1]} : vector<8x16xf32> to vector<1x16xf32>
    %60 = vector.broadcast %58 : vector<2x1xf32> to vector<2x16xf32>
    %61 = vector.broadcast %59 : vector<1x16xf32> to vector<2x16xf32>
    %62 = arith.mulf %60, %61 : vector<2x16xf32>
    %63 = arith.addf %57, %62 : vector<2x16xf32>
    %64 = vector.extract_strided_slice %4 {offsets = [0, 7], sizes = [2, 1], strides = [1, 1]} : vector<2x8xf32> to vector<2x1xf32>
    %65 = vector.extract_strided_slice %20 {offsets = [7, 0], sizes = [1, 16], strides = [1, 1]} : vector<8x16xf32> to vector<1x16xf32>
    %66 = vector.broadcast %64 : vector<2x1xf32> to vector<2x16xf32>
    %67 = vector.broadcast %65 : vector<1x16xf32> to vector<2x16xf32>
    %68 = arith.mulf %66, %67 : vector<2x16xf32>
    %69 = arith.addf %63, %68 : vector<2x16xf32>
    %c0_3 = arith.constant 0 : index
    %c0_4 = arith.constant 0 : index
    %70 = vector.load %arg2[%c0_3, %c0_4] : memref<2x16xf32, #tpu.memory_space<vmem>>, vector<2x16xf32>
    tpu.vector_store %arg2[%c0_3, %c0_4], %69 {strides = array<i32>} : memref<2x16xf32, #tpu.memory_space<vmem>>, vector<2x16xf32>,
    return
  }
}

</mosaic_0001>

<bundles_post_ra>
// kernel: tpu_custom_call.1
= control target key start
LH: loop header
LB: loop body
LE: loop exit
PB: predicated region body
PF: predicated region fallthrough
CT: control target
= control target key end

     0   :  { %7 = vsyncpa [#allocation3], 0  ;;  %s340_s0 = inlined_call_operand.hbm [shape: f32[2,16], index: 0, kind: input, shape index: {}]   ;;  %s341_s1 = inlined_call_operand.hbm [shape: f32[16,128], index: 1, kind: input, shape index: {}]   ;;  %s342_s2 = inlined_call_operand.hbm [shape: f32[2,16], index: 2, kind: output, shape index: {}]  }
   0x1   :  { %8 = vsyncpa [#allocation6], 0 }
   0x2   :  { %9 = vsyncpa [#allocation4], 0  ;;  %s268_s9 = smov [#allocation2]   ;;  %s269_s11 = smov [#allocation5]  }
   0x3   :  { %s16_s10 = sshll.u32 %s268_s9, 4  ;;  %s25_s12 = sshll.u32 %s269_s11, 4  ;;  %s17_s10 = int_to_ptr.vmem [resolvable:$true] %s16_s10  ;;  %s297_s12 = int_to_ptr.vmem [resolvable:$true] %s25_s12 }
   0x4   :  { %s196_s15 = scalar_lea.hbm %s340_s0, 32 }
   0x5   :  { %p197_p0 = scmp.ne.s32.totalorder %s340_s0, %s196_s15  ;;  %p200_p1 = scmp.lt.u32.totalorder %s196_s15, %s340_s0 }
   0x7   :  { %p202_p2 = pnand %p200_p1, %p197_p0 }
   0x9   :  { %205 = shalt.err (!%p202_p2)
}
   0xa   :  { %s206_s20 = scalar_lea.vmem %s17_s10, 32  ;;  %p211_p4 = scmp.lt.s32.totalorder %s17_s10, %s17_s10 }
   0xb   :  { %p207_p3 = scmp.ne.s32.totalorder %s17_s10, %s206_s20  ;;  %p212_p5 = scmp.lt.s32.totalorder %s206_s20, %s206_s20 }
   0xd   :  { %p213_p6 = por %p212_p5, %p211_p4 }
   0xf   :  { %p214_p7 = pnand %p213_p6, %p207_p3 }
  0x11   :  { %217 = shalt.err (!%p214_p7)
}
  0x12   :  { %19 = dma.hbm_to_vmem [thread:$0]  %s340_s0, 32, %s17_s10, [#allocation3]  }
  0x13   :  { %s218_s25 = scalar_lea.hbm %s341_s1, 256 }
  0x14   :  { %p219_p8 = scmp.ne.s32.totalorder %s341_s1, %s218_s25  ;;  %p222_p9 = scmp.lt.u32.totalorder %s218_s25, %s341_s1 }
  0x16   :  { %p224_p10 = pnand %p222_p9, %p219_p8 }
  0x18   :  { %227 = shalt.err (!%p224_p10)
}
  0x19   :  { %s228_s30 = scalar_lea.vmem %s297_s12, 256  ;;  %p233_p12 = scmp.lt.s32.totalorder %s297_s12, %s297_s12 }
  0x1a   :  { %p229_p11 = scmp.ne.s32.totalorder %s297_s12, %s228_s30  ;;  %p234_p13 = scmp.lt.s32.totalorder %s228_s30, %s228_s30 }
  0x1c   :  { %p235_p0 = por %p234_p13, %p233_p12 }
  0x1e   :  { %p236_p1 = pnand %p235_p0, %p229_p11 }
  0x20   :  { %239 = shalt.err (!%p236_p1)
}
  0x21   :  { %s270_s0 = smov 128   ;;  %s271_s3 = smov 8  }
  0x22   :  { %31 = dma.hbm_to_vmem [thread:$0]  %s341_s1, 256, %s297_s12, [#allocation6], %s270_s0, %s270_s0, %s271_s3  }
  0x23   :  { %262 = dma.done.wait [#allocation3], 32  }
  0x24   :  { %263 = vsyncadd [#allocation3], 4294967264 }
  0x25   :  { %264 = dma.done.wait [#allocation6], 256  }
  0x26   :  { %265 = vsyncadd [#allocation6], 4294967040  ;;  %v272_v0 = vmov 1   ;;  %v273_v1 = vmov 0   ;;  %v39_v2 = vld [vmem:[#allocation5] sm:$0xff]  ;;  %v40_v3 = vld [vmem:[#allocation5 + $0x8] sm:$0xff]  ;;  %v46_v11 = vlaneseq }
  0x27   :  { %186 = vset.pattern.permute.xlu1 %v272_v0  ;;  %184 = vset.pattern.permute.xlu0 %v273_v1  ;;  %v274_v4 = vmov 2   ;;  %v275_v5 = vmov 8   ;;  %v276_v6 = vmov 4   ;;  %v277_v7 = vmov 3   ;;  %v38_v14 = vld [vmem:[#allocation2] sm:$0x3] }
  0x28   :  { %57 = vperm.xlu1 %186, %v39_v2   ;;  %43 = vperm.xlu0 %184, %v39_v2   ;;  %v278_v8 = vmov 7   ;;  %v279_v9 = vmov 5   ;;  %v280_v10 = vmov 6   ;;  %v47_v12 = vshrl.u32 %v46_v11, 7  ;;  %s281_s1 = smov [#allocation7]  }
  0x29   :  { %s160_s6 = sshll.u32 %s281_s1, 4  ;;  %vm152_vm0 = vcmask 123904   ;;  %s161_s6 = int_to_ptr.vmem [resolvable:$true] %s160_s6 }
  0x2a   :  { %v48_v13 = vsub.s32 0, %v47_v12  ;;  %v62_v15 = vsub.s32 1, %v47_v12  ;;  %v98_v30 = vsub.s32 2, %v47_v12  ;;  %v108_v34 = vsub.s32 3, %v47_v12  ;;  %s240_s7 = scalar_lea.vmem %s161_s6, 32  ;;  %p245_p3 = scmp.lt.s32.totalorder %s161_s6, %s161_s6 }
  0x2b   :  { %v118_v40 = vsub.s32 4, %v47_v12  ;;  %v128_v45 = vsub.s32 5, %v47_v12  ;;  %v138_v52 = vsub.s32 6, %v47_v12  ;;  %v148_v53 = vsub.s32 7, %v47_v12  ;;  %p241_p2 = scmp.ne.s32.totalorder %s161_s6, %s240_s7  ;;  %p246_p4 = scmp.lt.s32.totalorder %s240_s7, %s240_s7 }
  0x2c   :  { %187 = vset.pattern.permute.xlu1 %v273_v1  ;;  %185 = vset.pattern.permute.xlu0 %v274_v4  ;;  %v49_v16 = vrot.slane %v38_v14, %v48_v13  ;;  %v63_v19 = vrot.slane %v38_v14, %v62_v15 }
  0x2d   :  { %69 = vperm.xlu1 %187, %v40_v3   ;;  %52 = vperm.xlu0 %185, %v39_v2   ;;  %p247_p5 = por %p246_p4, %p245_p3 }
  0x2f   :  { %p248_p6 = pnand %p247_p5, %p241_p2 }
  0x31   :  { %188 = vset.pattern.permute.xlu1 %v275_v5  ;;  %189 = vset.pattern.permute.xlu0 %v272_v0 }
  0x32   :  { %78 = vperm.xlu1 %188, %v40_v3   ;;  %83 = vperm.xlu0 %189, %v40_v3  }
  0x36   :  { %190 = vset.pattern.permute.xlu1 %v274_v4  ;;  %192 = vset.pattern.permute.xlu0 %v276_v6 }
  0x37   :  { %93 = vperm.xlu1 %190, %v40_v3   ;;  %113 = vperm.xlu0 %192, %v40_v3  }
  0x3b   :  { %191 = vset.pattern.permute.xlu1 %v277_v7  ;;  %195 = vset.pattern.permute.xlu0 %v278_v8 }
  0x3c   :  { %103 = vperm.xlu1 %191, %v40_v3   ;;  %143 = vperm.xlu0 %195, %v40_v3  }
  0x40   :  { %193 = vset.pattern.permute.xlu1 %v279_v9 }
  0x41   :  { %123 = vperm.xlu1 %193, %v40_v3  }
  0x45   :  { %194 = vset.pattern.permute.xlu1 %v280_v10 }
  0x46   :  { %133 = vperm.xlu1 %194, %v40_v3  }
  0xa7   :  { %v58_v17 = vpop.permute.xlu1 %57  ;;  %v44_v18 = vpop.permute.xlu0 %43 }
  0xa8   :  { %v50_v20 = vmul.f32 %v49_v16, %v44_v18  ;;  %v64_v23 = vmul.f32 %v63_v19, %v58_v17 }
  0xac   :  { %v70_v21 = vpop.permute.xlu1 %69  ;;  %v53_v22 = vpop.permute.xlu0 %52 }
  0xad   :  { %v55_v24 = vadd.f32 %v53_v22, %v50_v20 }
  0xaf   :  { %v65_v25 = vadd.f32 %v64_v23, %v55_v24 }
  0xb1   :  { %v66_v26 = vmax.f32 %v65_v25, 0.0  ;;  %v79_v27 = vpop.permute.xlu1 %78  ;;  %v84_v32 = vpop.permute.xlu0 %83 }
  0xb3   :  { %v75_v28 = vrot.slane %v66_v26, %v48_v13  ;;  %v89_v29 = vrot.slane %v66_v26, %v62_v15  ;;  %v99_v37 = vrot.slane %v66_v26, %v98_v30  ;;  %v109_v41 = vrot.slane %v66_v26, %v108_v34 }
  0xb4   :  { %v119_v47 = vrot.slane %v66_v26, %v118_v40  ;;  %v129_v51 = vrot.slane %v66_v26, %v128_v45  ;;  %v139_v56 = vrot.slane %v66_v26, %v138_v52  ;;  %v149_v59 = vrot.slane %v66_v26, %v148_v53 }
  0xb5   :  { %v76_v31 = vmul.f32 %v75_v28, %v70_v21  ;;  %v90_v36 = vmul.f32 %v89_v29, %v84_v32 }
  0xb6   :  { %v94_v33 = vpop.permute.xlu1 %93  ;;  %v114_v46 = vpop.permute.xlu0 %113 }
  0xb7   :  { %v81_v35 = vadd.f32 %v79_v27, %v76_v31  ;;  %v100_v39 = vmul.f32 %v99_v37, %v94_v33  ;;  %v120_v49 = vmul.f32 %v119_v47, %v114_v46 }
  0xb9   :  { %v91_v38 = vadd.f32 %v90_v36, %v81_v35 }
  0xbb   :  { %v101_v42 = vadd.f32 %v100_v39, %v91_v38  ;;  %v104_v43 = vpop.permute.xlu1 %103  ;;  %v144_v57 = vpop.permute.xlu0 %143 }
  0xbc   :  { %v110_v44 = vmul.f32 %v109_v41, %v104_v43  ;;  %v150_v62 = vmul.f32 %v149_v59, %v144_v57 }
  0xbe   :  { %v111_v48 = vadd.f32 %v110_v44, %v101_v42 }
  0xc0   :  { %v124_v50 = vpop.permute.xlu1 %123  ;;  %v121_v54 = vadd.f32 %v120_v49, %v111_v48 }
  0xc1   :  { %v130_v55 = vmul.f32 %v129_v51, %v124_v50 }
  0xc3   :  { %v131_v60 = vadd.f32 %v130_v55, %v121_v54 }
  0xc5   :  { %v134_v58 = vpop.permute.xlu1 %133 }
  0xc6   :  { %v140_v61 = vmul.f32 %v139_v56, %v134_v58 }
  0xc8   :  { %v141_v63 = vadd.f32 %v140_v61, %v131_v60 }
  0xca   :  { %v151_v0 = vadd.f32 %v150_v62, %v141_v63 }
  0xcc   :  { %153 = vst.msk [vmem:[#allocation7] sm:$0x3] %vm152_vm0, %v151_v0 }
  0xcd   :  { %251 = shalt.err (!%p248_p6)
}
  0xce   :  { %s252_s10 = scalar_lea.hbm %s342_s2, 32 }
  0xcf   :  { %p253_p7 = scmp.ne.s32.totalorder %s342_s2, %s252_s10  ;;  %p256_p8 = scmp.lt.u32.totalorder %s252_s10, %s342_s2 }
  0xd1   :  { %p258_p9 = pnand %p256_p8, %p253_p7 }
  0xd3   :  { %261 = shalt.err (!%p258_p9)
}
  0xd4   :  { %163 = dma.vmem_to_hbm [thread:$0]  %s161_s6, 32, %s342_s2, [#allocation4]  }
  0xd5   :  { %266 = dma.done.wait [#allocation4], 32  }
  0xd6   :  { %267 = vsyncadd [#allocation4], 4294967264 }
  0xd7   :  { %167 = vsyncpa [#allocation3], 1 }
  0xd8   :  { %168 = vsyncpa [#allocation6], 1 }
  0xd9   :  { %169 = vsyncpa [#allocation4], 1 }

</bundles_post_ra>
